<compile_context>
chip_gen: v7x
topology: tpu7x:2x2x1
jax: 0.10.0
libtpu: 0.0.40
codegen_flags: <defaults>
</compile_context>

<pallas_src>
import math
from functools import partial

import jax
import jax.numpy as jnp
from jax.experimental import pallas as pl
from jax.experimental.pallas import tpu as pltpu


def _round_up(a, b):
    return -(-a // b) * b


def _vmem_limit_bytes():
    """Generation-aware VMEM budget (v5e/v6e: 128 MiB, v7x: 64 MiB per core)."""
    cap = 64 * 1024 * 1024
    try:
        cap = int(getattr(pltpu.get_tpu_info(), "vmem_capacity_bytes", cap))
    except Exception:
        pass
    # Actual per-step need is only a few MiB; never ask for more than half the chip.
    return max(16 * 1024 * 1024, min(cap // 2, 48 * 1024 * 1024))


def _dcn_gemm_kernel(s0_ref, s1_ref, s2_ref, s3_ref, w_ref, b_ref, o_ref):
    """One (batch, position-tile) grid step.

    s*_ref : (1, K*C, PT) bf16   pre-weighted corner samples (one per bilinear corner)
    w_ref  : (Cout_pad, K*C) bf16  VMEM-resident weight slab
    b_ref  : (Cout_pad, 1) f32     VMEM-resident bias column
    o_ref  : (1, Cout_pad, PT) f32
    """
    # Corner combine on the VPU — explicit 4-term chain, no (Q, K*C, PT) temporary.
    cols = s0_ref[0] + s1_ref[0]
    cols = cols + s2_ref[0]
    cols = cols + s3_ref[0]                                        # (K*C, PT) bf16
    # Single fused GEMM over the full K*C contraction (native bf16 MXU, f32 acc).
    acc = jnp.dot(w_ref[...], cols, preferred_element_type=jnp.float32)
    o_ref[0] = acc + b_ref[...]


def dcnv2_forward(x, offset, mask, weight, bias,
                  stride=(1, 1), padding=(1, 1), dilation=(1, 1),
                  deformable_groups=1):
    """Matches torch DCNv2 / modulated_deform_conv2d forward (conv groups=1), NCHW."""
    N, C, H, W = x.shape
    Cout, Cin, kH, kW = weight.shape
    assert Cin == C, "conv groups != 1 not supported"
    sH, sW = stride
    pH, pW = padding
    dH, dW = dilation
    G = deformable_groups
    Cg = C // G
    K = kH * kW
    Ho = (H + 2 * pH - dH * (kH - 1) - 1) // sH + 1
    Wo = (W + 2 * pW - dW * (kW - 1) - 1) // sW + 1
    P = Ho * Wo
    R = C * K                                     # fused contraction length
    f32 = jnp.float32

    # -------- sampling-coordinate math (f32), shapes (N, G, K, P) --------
    off = offset.astype(f32).reshape(N, G, K, 2, P)
    dy = off[:, :, :, 0]
    dx = off[:, :, :, 1]
    msk = mask.astype(f32).reshape(N, G, K, P)

    base_y = ((jnp.arange(P) // Wo) * sH - pH).astype(f32)
    base_x = ((jnp.arange(P) % Wo) * sW - pW).astype(f32)
    ky = ((jnp.arange(K) // kW) * dH).astype(f32)
    kx = ((jnp.arange(K) % kW) * dW).astype(f32)

    p_y = base_y[None, None, None, :] + ky[None, None, :, None] + dy
    p_x = base_x[None, None, None, :] + kx[None, None, :, None] + dx

    # DCNv2 semantics: whole sample is zero unless -1 < p < size; fold that and
    # the modulation mask into the corner weights.
    vm = ((p_y > -1) & (p_x > -1) & (p_y < H) & (p_x < W)).astype(f32) * msk

    yl = jnp.floor(p_y)
    xl = jnp.floor(p_x)
    lh = p_y - yl
    lw = p_x - xl
    hh = 1.0 - lh
    hw = 1.0 - lw
    yl_i = yl.astype(jnp.int32)
    xl_i = xl.astype(jnp.int32)
    yh_i = yl_i + 1
    xh_i = xl_i + 1

    # -------- tiling --------
    Cout_pad = _round_up(Cout, 8)
    PT = min(1024, _round_up(P, 128))
    # Ensure >= 2 blocks on the parallel axes so both v7x TensorCores get work.
    if N * (_round_up(P, PT) // PT) < 2 and PT >= 256:
        PT = _round_up(PT // 2, 128)
    P_pad = _round_up(P, PT)

    # -------- corner gather + folded (bilinear * validity * mask) weights --------
    # TODO(synk): the per-pixel data-dependent gather has no clean Pallas-TPU
    # expression (BlockSpec index_maps are per-block), so it stays in XLA; the
    # corner weight is multiplied in right behind the gather (fuses, so only the
    # bf16 corner tensors are materialized in HBM) and the reshape to the kernel
    # layout (N, C*K, P) is a free view — no 6-D transpose anywhere.
    x_g = x.astype(jnp.bfloat16).reshape(N, G, Cg, H * W)

    def corner(yi, xi, bw):
        ok = ((yi >= 0) & (yi <= H - 1) & (xi >= 0) & (xi <= W - 1)).astype(f32)
        idx = (jnp.clip(yi, 0, H - 1) * W + jnp.clip(xi, 0, W - 1)).reshape(N, G, 1, K * P)
        v = jnp.take_along_axis(x_g, idx, axis=3).reshape(N, G, Cg, K, P)
        cw = bw * ok * vm                                    # (N, G, K, P) folded weight
        s = (v.astype(f32) * cw[:, :, None]).astype(jnp.bfloat16)
        s = s.reshape(N, R, P)                               # rows ordered (c, k) — free view
        if P_pad != P:
            s = jnp.pad(s, ((0, 0), (0, 0), (0, P_pad - P)))
        return s

    s0 = corner(yl_i, xl_i, hh * hw)
    s1 = corner(yl_i, xh_i, hh * lw)
    s2 = corner(yh_i, xl_i, lh * hw)
    s3 = corner(yh_i, xh_i, lh * lw)

    # -------- weight / bias prep (tiny; fully VMEM-resident in the kernel) --------
    w2d = weight.astype(f32).reshape(Cout, R)                # columns ordered (c, k)
    if Cout_pad != Cout:
        w2d = jnp.pad(w2d, ((0, Cout_pad - Cout), (0, 0)))
    w2d = w2d.astype(jnp.bfloat16)
    bias_col = bias.astype(f32)
    if Cout_pad != Cout:
        bias_col = jnp.pad(bias_col, (0, Cout_pad - Cout))
    bias_col = bias_col.reshape(Cout_pad, 1)

    grid = (N, P_pad // PT)                                  # both axes parallel
    out_pad = pl.pallas_call(
        _dcn_gemm_kernel,
        out_shape=jax.ShapeDtypeStruct((N, Cout_pad, P_pad), f32),
        grid=grid,
        in_specs=[pl.BlockSpec((1, R, PT), lambda n, j: (n, 0, j))] * 4
        + [
            pl.BlockSpec((Cout_pad, R), lambda n, j: (0, 0)),   # weight: resident
            pl.BlockSpec((Cout_pad, 1), lambda n, j: (0, 0)),   # bias: resident
        ],
        out_specs=pl.BlockSpec((1, Cout_pad, PT), lambda n, j: (n, 0, j)),
        compiler_params=pltpu.CompilerParams(
            dimension_semantics=("parallel", "parallel"),
            vmem_limit_bytes=_vmem_limit_bytes(),
        ),
    )(s0, s1, s2, s3, w2d, bias_col)

    out = out_pad[:, :Cout, :P]
    return out.reshape(N, Cout, Ho, Wo)


# ---------------- independent plain-JAX reference (for verification) ----------------
def _dcnv2_reference(x, offset, mask, weight, bias, stride, padding, dilation, G):
    N, C, H, W = x.shape
    Cout, _, kH, kW = weight.shape
    sH, sW = stride
    pH, pW = padding
    dH, dW = dilation
    K = kH * kW
    Cg = C // G
    Ho = (H + 2 * pH - dH * (kH - 1) - 1) // sH + 1
    Wo = (W + 2 * pW - dW * (kW - 1) - 1) // sW + 1
    f32 = jnp.float32
    x = x.astype(f32)

    off = offset.astype(f32).reshape(N, G, K, 2, Ho, Wo)
    dy, dx = off[:, :, :, 0], off[:, :, :, 1]
    msk = mask.astype(f32).reshape(N, G, K, Ho, Wo)

    ki = (jnp.arange(K) // kW).astype(f32)
    kj = (jnp.arange(K) % kW).astype(f32)
    hb = (jnp.arange(Ho) * sH - pH).astype(f32)
    wb = (jnp.arange(Wo) * sW - pW).astype(f32)
    py = hb[None, None, None, :, None] + (ki * dH)[None, None, :, None, None] + dy
    px = wb[None, None, None, None, :] + (kj * dW)[None, None, :, None, None] + dx
    valid = ((py > -1) & (px > -1) & (py < H) & (px < W)).astype(f32)

    hl = jnp.floor(py)
    wl = jnp.floor(px)
    lh, lw = py - hl, px - wl
    hh, hw_ = 1.0 - lh, 1.0 - lw
    hl_i = hl.astype(jnp.int32)
    wl_i = wl.astype(jnp.int32)
    hh_i = hl_i + 1
    wh_i = wl_i + 1

    xg = x.reshape(N, G, Cg, H * W)

    def corner(yi, xi, wgt):
        ok = ((yi >= 0) & (yi <= H - 1) & (xi >= 0) & (xi <= W - 1)).astype(f32)
        idx = jnp.clip(yi, 0, H - 1) * W + jnp.clip(xi, 0, W - 1)
        idx_f = idx.reshape(N, G, 1, K * Ho * Wo)
        v = jnp.take_along_axis(xg, idx_f, axis=3).reshape(N, G, Cg, K, Ho, Wo)
        return v * (wgt * ok * valid)[:, :, None]

    samp = (corner(hl_i, wl_i, hh * hw_) + corner(hl_i, wh_i, hh * lw)
            + corner(hh_i, wl_i, lh * hw_) + corner(hh_i, wh_i, lh * lw))
    samp = samp * msk[:, :, None]                       # (N, G, Cg, K, Ho, Wo)
    cols = samp.reshape(N, C * K, Ho * Wo)
    w2d = weight.reshape(Cout, C * K).astype(f32)
    out = jnp.einsum("ok,nkp->nop", w2d, cols) + bias.astype(f32)[None, :, None]
    return out.reshape(N, Cout, Ho, Wo)


if __name__ == "__main__":
    # Module config: DCNv2(in_channels=4, out_channels=4, kernel_size=3,
    #                      stride=1, padding=1, dilation=1, deformable_groups=1)
    N, Cin, H, W = 2, 4, 16, 16
    Cout, kH, kW = 4, 3, 3
    G = 1
    K = kH * kW

    key = jax.random.PRNGKey(0)
    k_x, k_off, k_msk, k_w, k_b = jax.random.split(key, 5)

    x = jax.random.normal(k_x, (N, Cin, H, W), dtype=jnp.float32)
    offset = jax.random.uniform(k_off, (N, 2 * G * K, H, W),
                                minval=-2.0, maxval=2.0, dtype=jnp.float32)
    mask = jax.random.uniform(k_msk, (N, G * K, H, W),
                              minval=0.0, maxval=1.0, dtype=jnp.float32)

    # weight init mirrors reset_parameters(); small random bias to exercise the bias path
    n_fan = Cin * kH * kW
    stdv = 1.0 / math.sqrt(n_fan)
    weight = jax.random.uniform(k_w, (Cout, Cin, kH, kW),
                                minval=-stdv, maxval=stdv, dtype=jnp.float32)
    bias = 0.1 * jax.random.normal(k_b, (Cout,), dtype=jnp.float32)

    fwd = jax.jit(partial(dcnv2_forward,
                          stride=(1, 1), padding=(1, 1), dilation=(1, 1),
                          deformable_groups=G))
    out = jax.block_until_ready(fwd(x, offset, mask, weight, bias))

    ref = _dcnv2_reference(x, offset, mask, weight, bias,
                           (1, 1), (1, 1), (1, 1), G)

    assert out.shape == (N, Cout, H, W)
    # bf16 streaming of the gathered pixels -> loosened tolerance (per review note)
    assert jnp.allclose(out, ref, atol=3e-2, rtol=3e-2), \
        float(jnp.max(jnp.abs(out - ref)))
    print("KERNEL_OK")
</pallas_src>

<mosaic_0001>
module attributes {stable_mosaic.version = 11 : i64} {
  func.func @_dcn_gemm_kernel(%arg0: i32, %arg1: i32, %arg2: memref<1x36x256xbf16, #tpu.memory_space<vmem>>, %arg3: memref<1x36x256xbf16, #tpu.memory_space<vmem>>, %arg4: memref<1x36x256xbf16, #tpu.memory_space<vmem>>, %arg5: memref<1x36x256xbf16, #tpu.memory_space<vmem>>, %arg6: memref<8x36xbf16, #tpu.memory_space<vmem>>, %arg7: memref<8x1xf32, #tpu.memory_space<vmem>>, %arg8: memref<1x8x256xf32, #tpu.memory_space<vmem>>) attributes {dimension_semantics = [#tpu.dimension_semantics<parallel>, #tpu.dimension_semantics<parallel>], iteration_bounds = array<i64: 2, 1>, scalar_prefetch = 0 : i64, scratch_operands = 0 : i64, tpu.core_type = #tpu.core_type<tc>, window_params = [{transform_indices = @transform_0, window_bounds = array<i64: 1, 36, 256>}, {transform_indices = @transform_1, window_bounds = array<i64: 1, 36, 256>}, {transform_indices = @transform_2, window_bounds = array<i64: 1, 36, 256>}, {transform_indices = @transform_3, window_bounds = array<i64: 1, 36, 256>}, {pipeline_mode = #tpu.pipeline_mode<synchronous>, transform_indices = @transform_4, window_bounds = array<i64: 8, 36>}, {pipeline_mode = #tpu.pipeline_mode<synchronous>, transform_indices = @transform_5, window_bounds = array<i64: 8, 1>}, {transform_indices = @transform_6, window_bounds = array<i64: 1, 8, 256>}]} {
    %c0 = arith.constant 0 : index
    %c0_0 = arith.constant 0 : index
    %c0_1 = arith.constant 0 : index
    %0 = vector.load %arg2[%c0, %c0_0, %c0_1] : memref<1x36x256xbf16, #tpu.memory_space<vmem>>, vector<1x36x256xbf16>
    %1 = vector.shape_cast %0 : vector<1x36x256xbf16> to vector<36x256xbf16>
    %c0_2 = arith.constant 0 : index
    %c0_3 = arith.constant 0 : index
    %c0_4 = arith.constant 0 : index
    %2 = vector.load %arg3[%c0_2, %c0_3, %c0_4] : memref<1x36x256xbf16, #tpu.memory_space<vmem>>, vector<1x36x256xbf16>
    %3 = vector.shape_cast %2 : vector<1x36x256xbf16> to vector<36x256xbf16>
    %4 = arith.addf %1, %3 : vector<36x256xbf16>
    %c0_5 = arith.constant 0 : index
    %c0_6 = arith.constant 0 : index
    %c0_7 = arith.constant 0 : index
    %5 = vector.load %arg4[%c0_5, %c0_6, %c0_7] : memref<1x36x256xbf16, #tpu.memory_space<vmem>>, vector<1x36x256xbf16>
    %6 = vector.shape_cast %5 : vector<1x36x256xbf16> to vector<36x256xbf16>
    %7 = arith.addf %4, %6 : vector<36x256xbf16>
    %c0_8 = arith.constant 0 : index
    %c0_9 = arith.constant 0 : index
    %c0_10 = arith.constant 0 : index
    %8 = vector.load %arg5[%c0_8, %c0_9, %c0_10] : memref<1x36x256xbf16, #tpu.memory_space<vmem>>, vector<1x36x256xbf16>
    %9 = vector.shape_cast %8 : vector<1x36x256xbf16> to vector<36x256xbf16>
    %10 = arith.addf %7, %9 : vector<36x256xbf16>
    %c0_11 = arith.constant 0 : index
    %c0_12 = arith.constant 0 : index
    %11 = vector.load %arg6[%c0_11, %c0_12] : memref<8x36xbf16, #tpu.memory_space<vmem>>, vector<8x36xbf16>
    %cst = arith.constant dense<0.000000e+00> : vector<8x256xf32>
    %12 = tpu.matmul %11, %10, %cst {dimension_numbers = #tpu.dot_dimension_numbers<[1], [0], [0], [1], [0, 0, 1, 1], [], []>} : vector<8x36xbf16>, vector<36x256xbf16>, vector<8x256xf32> -> vector<8x256xf32>
    %c0_13 = arith.constant 0 : index
    %c0_14 = arith.constant 0 : index
    %13 = vector.load %arg7[%c0_13, %c0_14] : memref<8x1xf32, #tpu.memory_space<vmem>>, vector<8x1xf32>
    %14 = vector.broadcast %13 : vector<8x1xf32> to vector<8x256xf32>
    %15 = arith.addf %12, %14 : vector<8x256xf32>
    %c0_15 = arith.constant 0 : index
    %c0_16 = arith.constant 0 : index
    %c0_17 = arith.constant 0 : index
    %16 = vector.load %arg8[%c0_15, %c0_16, %c0_17] : memref<1x8x256xf32, #tpu.memory_space<vmem>>, vector<1x8x256xf32>
    %17 = vector.shape_cast %16 : vector<1x8x256xf32> to vector<8x256xf32>
    %18 = vector.shape_cast %15 : vector<8x256xf32> to vector<1x8x256xf32>
    tpu.vector_store %arg8[%c0_15, %c0_16, %c0_17], %18 {strides = array<i32>} : memref<1x8x256xf32, #tpu.memory_space<vmem>>, vector<1x8x256xf32>,
    return
  }
  func.func @transform_0(%arg0: i32, %arg1: i32) -> (i32, i32, i32) {
    %c0_i32 = arith.constant 0 : i32
    %c0_i32_0 = arith.constant 0 : i32
    return %arg0, %c0_i32, %arg1 : i32, i32, i32
  }
  func.func @transform_1(%arg0: i32, %arg1: i32) -> (i32, i32, i32) {
    %c0_i32 = arith.constant 0 : i32
    %c0_i32_0 = arith.constant 0 : i32
    return %arg0, %c0_i32, %arg1 : i32, i32, i32
  }
  func.func @transform_2(%arg0: i32, %arg1: i32) -> (i32, i32, i32) {
    %c0_i32 = arith.constant 0 : i32
    %c0_i32_0 = arith.constant 0 : i32
    return %arg0, %c0_i32, %arg1 : i32, i32, i32
  }
  func.func @transform_3(%arg0: i32, %arg1: i32) -> (i32, i32, i32) {
    %c0_i32 = arith.constant 0 : i32
    %c0_i32_0 = arith.constant 0 : i32
    return %arg0, %c0_i32, %arg1 : i32, i32, i32
  }
  func.func @transform_4(%arg0: i32, %arg1: i32) -> (i32, i32) {
    %c0_i32 = arith.constant 0 : i32
    %c0_i32_0 = arith.constant 0 : i32
    %c0_i32_1 = arith.constant 0 : i32
    return %c0_i32, %c0_i32_0 : i32, i32
  }
  func.func @transform_5(%arg0: i32, %arg1: i32) -> (i32, i32) {
    %c0_i32 = arith.constant 0 : i32
    %c0_i32_0 = arith.constant 0 : i32
    %c0_i32_1 = arith.constant 0 : i32
    return %c0_i32, %c0_i32_0 : i32, i32
  }
  func.func @transform_6(%arg0: i32, %arg1: i32) -> (i32, i32, i32) {
    %c0_i32 = arith.constant 0 : i32
    %c0_i32_0 = arith.constant 0 : i32
    return %arg0, %c0_i32, %arg1 : i32, i32, i32
  }
}

</mosaic_0001>

<bundles_post_ra>
// kernel: dcnv2_forward.1
= control target key start
LH: loop header
LB: loop body
LE: loop exit
PB: predicated region body
PF: predicated region fallthrough
CT: control target
= control target key end

     0   :  { %s771_s21 = smov 0   ;;  %s773_s22 = smov 0   ;;  %s837_s0 = inlined_call_operand.vmem [shape: bf16[2,36,256], index: 0, kind: input, shape index: {}]   ;;  %s838_s1 = inlined_call_operand.vmem [shape: bf16[2,36,256], index: 1, kind: input, shape index: {}]   ;;  %s839_s2 = inlined_call_operand.vmem [shape: bf16[2,36,256], index: 2, kind: input, shape index: {}]   ;;  %s840_s3 = inlined_call_operand.vmem [shape: bf16[2,36,256], index: 3, kind: input, shape index: {}]   ;;  %s841_s4 = inlined_call_operand.vmem [shape: bf16[8,36], index: 4, kind: input, shape index: {}]   ;;  %s842_s5 = inlined_call_operand.vmem [shape: f32[8,1], index: 5, kind: input, shape index: {}]   ;;  %s843_s6 = inlined_call_operand.vmem [shape: f32[2,8,256], index: 6, kind: output, shape index: {}]  }
   0x1   :  { %s775_s23 = smov 0  }
   0x2 LB: > { %s28_s24 = sadd.s32 1, %s729_s22  ;;  %p666_p0 = scmp.ge.s32.totalorder %s733_s23, 1  ;;  %s733_s23 = sphi %s775_s23, %s16_s23   ;;  %s729_s22 = sphi %s773_s22, %s845_s22   ;;  %s725_s21 = sphi %s771_s21, %s844_s21  }
   0x3   : > { %p30_p1 = scmp.ge.s32.totalorder %s28_s24, 2  ;;  %p284_p2 = scmp.lt.s32.totalorder %s733_s23, 3 }
   0x5   : > { %s847_s24 = smov (%p30_p1, %s28_s24), 0  ;;  %p285_p3 = pnand %p666_p0, %p284_p2 }
   0x6   : > { %p350_p4 = scmp.lt.s32.totalorder (!%p285_p3), %s725_s21, 1  ;;  %v735_v0 = vmov (!%p285_p3), 0   ;;  %v436_v1 = vld [vmem:[%s842_s5] sm:$0xff] (!%p285_p3)  ;;  %vm471_vm0 = vcmask (!%p285_p3), 1041408   ;;  %vm467_vm1 = vcmask (!%p285_p3), 293888  }
   0x7   : > { %288 = sbr.rel (%p285_p3) target bundleno = 256 (0x100), region = 44  ;;  %510 = vmatprep.mubr.bf16.mxu0 (!%p285_p3), %v735_v0  ;;  %710 = vset.pattern.permute.xlu0 (!%p285_p3), %v735_v0  ;;  %v435_v44 = vld [vmem:[%s841_s4] sm:$0xf] (!%p285_p3) }
   0x8   : > { %439 = vperm.xlu0 (!%p285_p3), %710, %v436_v1  }
   0xe   : > { %s849_s21 = smov (!%p350_p4, %s725_s21), 1 }
   0xf   : > { %s684_s27 = smul.u32 40, %s849_s21  ;;  %s683_s18 = sshll.u32 %s849_s21, 4 }
  0x10   : > { %s397_s25 = scalar_lea.vmem %s843_s6, %s683_s18 }
  0x11   : > { %s357_s30 = scalar_lea.vmem %s837_s0, %s684_s27  ;;  %s367_s9 = scalar_lea.vmem %s838_s1, %s684_s27 }
  0x12   : > { %s804_s12 = scalar_lea.vmem %s839_s2, %s684_s27  ;;  %s809_s15 = scalar_lea.vmem %s840_s3, %s684_s27  ;;  %v400_v2 = vld [vmem:[%s357_s30] sm:$0xff]  ;;  %v401_v3 = vld [vmem:[%s357_s30 + $0x8] sm:$0xff]  ;;  %v402_v12 = vld [vmem:[%s357_s30 + $0x10] sm:$0xff] }
  0x13   : > { %v405_v4 = vld [vmem:[%s367_s9] sm:$0xff]  ;;  %v406_v5 = vld [vmem:[%s367_s9 + $0x8] sm:$0xff]  ;;  %v403_v14 = vld [vmem:[%s357_s30 + $0x18] sm:$0xff] }
  0x14   : > { %v410_v6 = vadd.bf16 %v405_v4, %v400_v2  ;;  %v415_v7 = vld [vmem:[%s804_s12] sm:$0xff]  ;;  %v416_v8 = vld [vmem:[%s804_s12 + $0x8] sm:$0xff]  ;;  %v411_v9 = vadd.bf16 %v406_v5, %v401_v3  ;;  %v407_v15 = vld [vmem:[%s367_s9 + $0x10] sm:$0xff] }
  0x15   : > { %v425_v10 = vld [vmem:[%s809_s15] sm:$0xff]  ;;  %v426_v11 = vld [vmem:[%s809_s15 + $0x8] sm:$0xff]  ;;  %v408_v16 = vld [vmem:[%s367_s9 + $0x18] sm:$0xff]  ;;  %v412_v18 = vadd.bf16 %v407_v15, %v402_v12 }
  0x16   : > { %v420_v13 = vadd.bf16 %v415_v7, %v410_v6  ;;  %v421_v17 = vadd.bf16 %v416_v8, %v411_v9  ;;  %v413_v19 = vadd.bf16 %v408_v16, %v403_v14  ;;  %v417_v20 = vld [vmem:[%s804_s12 + $0x10] sm:$0xff]  ;;  %v418_v21 = vld [vmem:[%s804_s12 + $0x18] sm:$0xff]  ;;  %v404_v25 = vld [vmem:[%s357_s30 + $0x20] sm:$0x33] }
  0x17   : > { %v427_v22 = vld [vmem:[%s809_s15 + $0x10] sm:$0xff]  ;;  %v428_v24 = vld [vmem:[%s809_s15 + $0x18] sm:$0xff]  ;;  %v409_v26 = vld [vmem:[%s367_s9 + $0x20] sm:$0x33]  ;;  %v422_v28 = vadd.bf16 %v417_v20, %v412_v18 }
  0x18   : > { %v430_v23 = vadd.bf16 %v425_v10, %v420_v13  ;;  %v431_v27 = vadd.bf16 %v426_v11, %v421_v17  ;;  %v423_v29 = vadd.bf16 %v418_v21, %v413_v19  ;;  %v414_v30 = vadd.bf16 %v409_v26, %v404_v25  ;;  %v419_v31 = vld [vmem:[%s804_s12 + $0x20] sm:$0x33] }
  0x19   : > { %v432_v34 = vadd.bf16 %v427_v22, %v422_v28  ;;  %v429_v36 = vld [vmem:[%s809_s15 + $0x20] sm:$0x33] }
  0x1a   : > { %v674_v32 = vcombine.high %v430_v23, %v431_v27  ;;  %v673_v33 = vcombine.low %v430_v23, %v431_v27  ;;  %v433_v35 = vadd.bf16 %v428_v24, %v423_v29  ;;  %v424_v37 = vadd.bf16 %v419_v31, %v414_v30 }
  0x1c   : > { %478 = vmatprep.subr.bf16.mxu0 %v674_v32  ;;  %v676_v38 = vcombine.high %v432_v34, %v433_v35  ;;  %v675_v39 = vcombine.low %v432_v34, %v433_v35  ;;  %v434_v40 = vadd.bf16 %v429_v36, %v424_v37 }
  0x1d   : > { %479 = vmatpush1.bf16.msra.mxu0 %v673_v33 }
  0x1e   : > { %480 = vmatprep.subr.bf16.mxu0 %v676_v38  ;;  %v678_v41 = vcombine.high %v434_v40, %v434_v40  ;;  %v677_v42 = vcombine.low %v434_v40, %v434_v40 }
  0x20   : > { %v473_v43 = vsel %vm471_vm0, %v677_v42, 0 }
  0x21   : > { %481 = vmatpush1.bf16.msra.mxu0 %v675_v39 }
  0x22   : > { %679 = vmatprep.subr.msk.bf16.mxu0 %vm471_vm0, %v678_v41 }
  0x25   : > { %483 = vmatpush1.bf16.msra.mxu0 %v473_v43 }
  0x28   : > { %680 = vmatmul.mubr.msk.bf16.vlgmr.msra.gmra.mrb[0].mxu0 %vm467_vm1, %v435_v44 }
  0x87   : > { %v440_v45 = vpop.permute.xlu0 %439 }
  0xfb   : > { %v512_v46 = vpop.f32.mrb[0].mxu0 }
  0xfc   : > { %v513_v47 = vadd.f32 %v512_v46, %v440_v45  ;;  %v514_v48 = vpop.f32.mrb[1].mxu0 }
  0xfd   : > { %v515_v49 = vadd.f32 %v514_v48, %v440_v45  ;;  %v516_v50 = vpop.f32.mrb[2].mxu0 }
  0xfe   : > { %519 = vst [vmem:[%s397_s25] sm:$0xff] %v513_v47  ;;  %v517_v51 = vpop.f32.mrb[3].mxu0 }
  0xff   : > { %520 = vst [vmem:[%s397_s25 + $0x8] sm:$0xff] %v515_v49 }
 0x100 PF: > { %s16_s23 = sadd.s32 1, %s733_s23   ;;  %s844_s21 = smov %s729_s22 }
 0x101   : > { %p13_p5 = scmp.ge.s32.totalorder %s16_s23, 4   ;;  %s845_s22 = smov %s847_s24 }
 0x103   :  { %15 = sbr.rel (!%p13_p5) target bundleno = 2 (0x2), region = 83 }

</bundles_post_ra>
